<compile_context>
chip_gen: v6e
topology: v6e:2x2x1
jax: 0.10.0
libtpu: 0.0.40
codegen_flags: <defaults>
</compile_context>

<pallas_src>
import jax
import jax.numpy as jnp
from jax.experimental import pallas as pl
from jax.experimental.pallas import tpu as pltpu


def create_rect_1d(N, cutoff):
    """Exact port of the 1-D rect construction in create_recon_rect."""
    cutoff_low = int(N * cutoff // 2)
    cutoff_high = int(N - cutoff_low)
    idx = jnp.arange(N)
    rect = jnp.where((idx > cutoff_low) & (idx < cutoff_high), 0.0, 1.0).astype(jnp.float32)
    if N % 4 == 0:
        rect = rect.at[cutoff_low].set(0.5)
        rect = rect.at[cutoff_high].set(0.5)
    return rect


def recon_filter_matrix_T(N, cutoff, up, scale=1.0, dtype=jnp.float32):
    """Transposed reconstruction matrix, shape (N//up, N).

    B (N, N//up) satisfies  B @ x == real(ifft(rect * fft(zero_upsample(x)))).
    Built in O(N^2):  A[m,n] = (1/N) sum_k rect[k] cos(2*pi*k*(m-n)/N)
                             = [(C*rect) @ C^T + (S*rect) @ S^T][m,n] / N
    with C = cos(2*pi*k*m/N), S = sin(2*pi*k*m/N).  Returns (scale * B).T.
    """
    rect = create_rect_1d(N, cutoff)                          # (N,)
    k = jnp.arange(N, dtype=jnp.float32)
    ang = (2.0 * jnp.pi / N) * jnp.outer(k, k)                # (N, N)
    C = jnp.cos(ang)
    S = jnp.sin(ang)
    A = ((C * rect) @ C.T + (S * rect) @ S.T) / N             # (N, N) real circular ideal LPF
    B = A[:, ::up]                                            # (N, N//up)
    return (B * scale).T.astype(dtype)                        # (N//up, N)


def _upsample_kernel(x_ref, bwT_ref, bhT_ref, o_ref):
    """One grid step: G images -> two large matmuls + two minor-dim swaps."""
    G, H, W = x_ref.shape
    Wup = bwT_ref.shape[1]
    Hup = bhT_ref.shape[1]

    # Pass 1: filter along W.   (G*H, W) @ (W, Wup) -> (G*H, Wup)
    x2 = x_ref[...].reshape(G * H, W)                         # free reshape (H multiple of 8)
    t = jnp.dot(x2, bwT_ref[...], preferred_element_type=jnp.float32)

    # Bring H into the contraction (lane) position for pass 2 (XLU transpose, off the MXU path).
    t = jnp.swapaxes(t.reshape(G, H, Wup), 1, 2)              # (G, Wup, H)

    # Pass 2: filter along H (scale folded into bhT).  (G*Wup, H) @ (H, Hup) -> (G*Wup, Hup)
    o = jnp.dot(t.reshape(G * Wup, H), bhT_ref[...], preferred_element_type=jnp.float32)

    # Back to image layout and store.
    o_ref[...] = jnp.swapaxes(o.reshape(G, Wup, Hup), 1, 2).astype(o_ref.dtype)


def upsample_rfft(x, up=2, images_per_block=8, filter_dtype=jnp.float32):
    """Pallas implementation of UpsampleRFFT.forward.

    x: (B, C, H, W) float32  ->  (B, C, H*up, W*up) float32.
    images_per_block: images processed per grid step (reduce for very large images / v7x VMEM).
    filter_dtype: set to jnp.bfloat16 on v6e/v7x for extra MXU throughput (f32 accumulation kept);
                  default f32 for tight numerical agreement with the FFT reference.
    """
    B, C, H, W = x.shape
    Hup, Wup = H * up, W * up
    cutoff = 1.0 / up
    BC = B * C

    # Host-side, one-time filter construction; scale up**2 folded into the H filter.
    bhT = recon_filter_matrix_T(Hup, cutoff, up, scale=float(up * up), dtype=filter_dtype)  # (H, Hup)
    bwT = recon_filter_matrix_T(Wup, cutoff, up, scale=1.0, dtype=filter_dtype)             # (W, Wup)

    G = max(1, min(images_per_block, BC))
    BCp = ((BC + G - 1) // G) * G                             # pad batch*channel to a multiple of G

    xf = x.reshape(BC, H, W).astype(jnp.float32)
    if BCp != BC:
        xf = jnp.pad(xf, ((0, BCp - BC), (0, 0), (0, 0)))

    out = pl.pallas_call(
        _upsample_kernel,
        out_shape=jax.ShapeDtypeStruct((BCp, Hup, Wup), jnp.float32),
        grid_spec=pltpu.PrefetchScalarGridSpec(
            num_scalar_prefetch=0,
            grid=(BCp // G,),
            in_specs=[
                pl.BlockSpec((G, H, W), lambda i: (i, 0, 0)),   # G images per grid step
                pl.BlockSpec((W, Wup), lambda i: (0, 0)),       # W-filter (pre-transposed, reused)
                pl.BlockSpec((H, Hup), lambda i: (0, 0)),       # H-filter (pre-transposed, scaled)
            ],
            out_specs=pl.BlockSpec((G, Hup, Wup), lambda i: (i, 0, 0)),
        ),
        compiler_params=pltpu.CompilerParams(dimension_semantics=("parallel",)),
    )(xf, bwT, bhT)

    return out[:BC].reshape(B, C, Hup, Wup)


def upsample_rfft_reference(x, up=2):
    """Pure-JAX reference mirroring the PyTorch module (for correctness check)."""
    B, C, H, W = x.shape
    xr = x.reshape(B, C, H, 1, W, 1)
    xr = jnp.pad(xr, ((0, 0), (0, 0), (0, 0), (0, up - 1), (0, 0), (0, up - 1)))
    xu = xr.reshape(B, C, H * up, W * up)
    N1, N2 = H * up, W * up
    r1 = create_rect_1d(N1, 1.0 / up)
    r2 = create_rect_1d(N2, 1.0 / up)
    rect = (r1[:, None] * r2[None, :])[:, : int(N2 / 2 + 1)]
    xfft = jnp.fft.rfft2(xu)
    out = jnp.fft.irfft2(xfft * rect)
    return out * (up ** 2)


if __name__ == "__main__":
    key = jax.random.PRNGKey(0)
    x = jax.random.normal(key, (2, 4, 16, 16), dtype=jnp.float32)

    out = upsample_rfft(x, up=2)
    out = jax.block_until_ready(out)

    ref = jax.block_until_ready(upsample_rfft_reference(x, up=2))
    assert out.shape == (2, 4, 32, 32), out.shape
    assert jnp.allclose(out, ref, atol=5e-3, rtol=5e-3), float(jnp.max(jnp.abs(out - ref)))

    print("KERNEL_OK")
</pallas_src>

<mosaic_0001>
module attributes {stable_mosaic.version = 11 : i64} {
  func.func @_upsample_kernel(%arg0: i32, %arg1: memref<8x16x16xf32, #tpu.memory_space<vmem>>, %arg2: memref<16x32xf32, #tpu.memory_space<vmem>>, %arg3: memref<16x32xf32, #tpu.memory_space<vmem>>, %arg4: memref<8x32x32xf32, #tpu.memory_space<vmem>>) attributes {dimension_semantics = [#tpu.dimension_semantics<parallel>], iteration_bounds = array<i64: 1>, scalar_prefetch = 0 : i64, scratch_operands = 0 : i64, tpu.core_type = #tpu.core_type<tc>, window_params = [{transform_indices = @transform_0, window_bounds = array<i64: 8, 16, 16>}, {pipeline_mode = #tpu.pipeline_mode<synchronous>, transform_indices = @transform_1, window_bounds = array<i64: 16, 32>}, {pipeline_mode = #tpu.pipeline_mode<synchronous>, transform_indices = @transform_2, window_bounds = array<i64: 16, 32>}, {transform_indices = @transform_3, window_bounds = array<i64: 8, 32, 32>}]} {
    %c0 = arith.constant 0 : index
    %c0_0 = arith.constant 0 : index
    %c0_1 = arith.constant 0 : index
    %0 = vector.load %arg1[%c0, %c0_0, %c0_1] : memref<8x16x16xf32, #tpu.memory_space<vmem>>, vector<8x16x16xf32>
    %1 = vector.shape_cast %0 : vector<8x16x16xf32> to vector<128x16xf32>
    %c0_2 = arith.constant 0 : index
    %c0_3 = arith.constant 0 : index
    %2 = vector.load %arg2[%c0_2, %c0_3] : memref<16x32xf32, #tpu.memory_space<vmem>>, vector<16x32xf32>
    %cst = arith.constant dense<0.000000e+00> : vector<128x32xf32>
    %3 = tpu.matmul %1, %2, %cst {dimension_numbers = #tpu.dot_dimension_numbers<[1], [0], [0], [1], [0, 0, 1, 1], [], []>} : vector<128x16xf32>, vector<16x32xf32>, vector<128x32xf32> -> vector<128x32xf32>
    %4 = vector.shape_cast %3 : vector<128x32xf32> to vector<8x16x32xf32>
    %5 = tpu.transpose %4, [0, 2, 1] : vector<8x16x32xf32> -> vector<8x32x16xf32>
    %6 = vector.shape_cast %5 : vector<8x32x16xf32> to vector<256x16xf32>
    %c0_4 = arith.constant 0 : index
    %c0_5 = arith.constant 0 : index
    %7 = vector.load %arg3[%c0_4, %c0_5] : memref<16x32xf32, #tpu.memory_space<vmem>>, vector<16x32xf32>
    %cst_6 = arith.constant dense<0.000000e+00> : vector<256x32xf32>
    %8 = tpu.matmul %6, %7, %cst_6 {dimension_numbers = #tpu.dot_dimension_numbers<[1], [0], [0], [1], [0, 0, 1, 1], [], []>} : vector<256x16xf32>, vector<16x32xf32>, vector<256x32xf32> -> vector<256x32xf32>
    %9 = vector.shape_cast %8 : vector<256x32xf32> to vector<8x32x32xf32>
    %10 = tpu.transpose %9, [0, 2, 1] : vector<8x32x32xf32> -> vector<8x32x32xf32>
    %c0_7 = arith.constant 0 : index
    %c0_8 = arith.constant 0 : index
    %c0_9 = arith.constant 0 : index
    %11 = vector.load %arg4[%c0_7, %c0_8, %c0_9] : memref<8x32x32xf32, #tpu.memory_space<vmem>>, vector<8x32x32xf32>
    tpu.vector_store %arg4[%c0_7, %c0_8, %c0_9], %10 {strides = array<i32>} : memref<8x32x32xf32, #tpu.memory_space<vmem>>, vector<8x32x32xf32>,
    return
  }
  func.func @transform_0(%arg0: i32) -> (i32, i32, i32) {
    %c0_i32 = arith.constant 0 : i32
    %c0_i32_0 = arith.constant 0 : i32
    %c0_i32_1 = arith.constant 0 : i32
    return %arg0, %c0_i32, %c0_i32_0 : i32, i32, i32
  }
  func.func @transform_1(%arg0: i32) -> (i32, i32) {
    %c0_i32 = arith.constant 0 : i32
    %c0_i32_0 = arith.constant 0 : i32
    %c0_i32_1 = arith.constant 0 : i32
    return %c0_i32, %c0_i32_0 : i32, i32
  }
  func.func @transform_2(%arg0: i32) -> (i32, i32) {
    %c0_i32 = arith.constant 0 : i32
    %c0_i32_0 = arith.constant 0 : i32
    %c0_i32_1 = arith.constant 0 : i32
    return %c0_i32, %c0_i32_0 : i32, i32
  }
  func.func @transform_3(%arg0: i32) -> (i32, i32, i32) {
    %c0_i32 = arith.constant 0 : i32
    %c0_i32_0 = arith.constant 0 : i32
    %c0_i32_1 = arith.constant 0 : i32
    return %arg0, %c0_i32, %c0_i32_0 : i32, i32, i32
  }
}

</mosaic_0001>

<bundles_post_ra>
// kernel: tpu_custom_call.1
= control target key start
LH: loop header
LB: loop body
LE: loop exit
PB: predicated region body
PF: predicated region fallthrough
CT: control target
= control target key end

     0   :  { %8 = vsyncpa [#allocation3], 0  ;;  %s1561_s0 = inlined_call_operand.hbm [shape: f32[8,16,16], index: 0, kind: input, shape index: {}]   ;;  %s1562_s1 = inlined_call_operand.hbm [shape: f32[16,32], index: 1, kind: input, shape index: {}]   ;;  %s1563_s2 = inlined_call_operand.hbm [shape: f32[16,32], index: 2, kind: input, shape index: {}]   ;;  %s1564_s3 = inlined_call_operand.hbm [shape: f32[8,32,32], index: 3, kind: output, shape index: {}]  }
   0x1   :  { %9 = vsyncpa [#allocation6], 0 }
   0x2   :  { %10 = vsyncpa [#allocation4], 0  ;;  %s1431_s12 = smov [#allocation5]   ;;  %s1432_s14 = smov [#allocation2]  }
   0x3   :  { %s28_s13 = sshll.u32 %s1431_s12, 4  ;;  %s16_s15 = sshll.u32 %s1432_s14, 4  ;;  %s29_s13 = int_to_ptr.vmem [resolvable:$true] %s28_s13  ;;  %s17_s15 = int_to_ptr.vmem [resolvable:$true] %s16_s15 }
   0x4   :  { %s1353_s16 = scalar_lea.vmem %s29_s13, 256  ;;  %p1358_p1 = scmp.lt.s32.totalorder %s29_s13, %s29_s13 }
   0x5   :  { %p1354_p0 = scmp.ne.s32.totalorder %s29_s13, %s1353_s16  ;;  %p1359_p2 = scmp.lt.s32.totalorder %s1353_s16, %s1353_s16 }
   0x7   :  { %p1360_p3 = por %p1359_p2, %p1358_p1 }
   0x9   :  { %p1361_p4 = pnand %p1360_p3, %p1354_p0 }
   0xb   :  { %1364 = shalt.err (!%p1361_p4)
}
   0xc   :  { %s1433_s17 = smov 128   ;;  %s1434_s18 = smov 8  }
   0xd   :  { %34 = dma.hbm_to_vmem [thread:$0]  %s1562_s1, 256, %s29_s13, [#allocation6], %s1433_s17, %s1433_s17, %s1434_s18  }
   0xe   :  { %s1373_s21 = scalar_lea.vmem %s17_s15, 2048  ;;  %p1378_p6 = scmp.lt.s32.totalorder %s17_s15, %s17_s15 }
   0xf   :  { %p1374_p5 = scmp.ne.s32.totalorder %s17_s15, %s1373_s21  ;;  %p1379_p7 = scmp.lt.s32.totalorder %s1373_s21, %s1373_s21 }
  0x11   :  { %p1380_p8 = por %p1379_p7, %p1378_p6 }
  0x13   :  { %p1381_p9 = pnand %p1380_p8, %p1374_p5 }
  0x15   :  { %1384 = shalt.err (!%p1381_p9)
}
  0x16   :  { %22 = dma.hbm_to_vmem [thread:$0]  %s1561_s0, 2048, %s17_s15, [#allocation3], %s1433_s17, %s1433_s17, %s1434_s18  }
  0x17   :  { %s1435_s24 = smov [#allocation7]  }
  0x18   :  { %s40_s25 = sshll.u32 %s1435_s24, 4  ;;  %s41_s25 = int_to_ptr.vmem [resolvable:$true] %s40_s25 }
  0x19   :  { %s1393_s26 = scalar_lea.vmem %s41_s25, 256  ;;  %p1398_p11 = scmp.lt.s32.totalorder %s41_s25, %s41_s25 }
  0x1a   :  { %p1394_p10 = scmp.ne.s32.totalorder %s41_s25, %s1393_s26  ;;  %p1399_p12 = scmp.lt.s32.totalorder %s1393_s26, %s1393_s26 }
  0x1c   :  { %p1400_p13 = por %p1399_p12, %p1398_p11 }
  0x1e   :  { %p1401_p0 = pnand %p1400_p13, %p1394_p10 }
  0x20   :  { %1404 = shalt.err (!%p1401_p0)
}
  0x21   :  { %46 = dma.hbm_to_vmem [thread:$0]  %s1563_s2, 256, %s41_s25, [#allocation6], %s1433_s17, %s1433_s17, %s1434_s18  }
  0x22   :  { %1425 = dma.done.wait [#allocation3], 2048  }
  0x23   :  { %1426 = vsyncadd [#allocation3], 4294965248 }
  0x24   :  { %1427 = dma.done.wait [#allocation6], 512  }
  0x25   :  { %1428 = vsyncadd [#allocation6], 4294966784  ;;  %vm74_vm0 = vcmask 130048   ;;  %v73_v0 = vld [vmem:[#allocation5 + $0x8] sm:$0xff]  ;;  %v72_v1 = vld [vmem:[#allocation5] sm:$0xff]  ;;  %vm1103_vm1 = vcmask 261120  }
  0x26   :  { %v56_v2 = vld [vmem:[#allocation2] sm:$0xff]  ;;  %1254 = vmatprep.subr.mxu0 %v73_v0  ;;  %v57_v3 = vld [vmem:[#allocation2 + $0x8] sm:$0xff]  ;;  %v58_v4 = vld [vmem:[#allocation2 + $0x10] sm:$0xff]  ;;  %s1436_s0 = smov [#allocation8]  }
  0x27   :  { %1258 = vmatprep.mubr.msk.f32.mxu0 %vm74_vm0, %v56_v2  ;;  %1255 = vmatpush3.msra.mxu0 %v73_v0  ;;  %v59_v5 = vld [vmem:[#allocation2 + $0x18] sm:$0xff]  ;;  %v60_v6 = vld [vmem:[#allocation2 + $0x20] sm:$0xff]  ;;  %v61_v7 = vld [vmem:[#allocation2 + $0x28] sm:$0xff]  ;;  %s1141_s2 = sshll.u32 %s1436_s0, 4  ;;  %s1142_s2 = int_to_ptr.vmem [resolvable:$true] %s1141_s2 }
  0x28   :  { %1256 = vmatprep.subr.mxu0 %v72_v1  ;;  %v62_v8 = vld [vmem:[#allocation2 + $0x30] sm:$0xff]  ;;  %v63_v9 = vld [vmem:[#allocation2 + $0x38] sm:$0xff]  ;;  %v64_v10 = vld [vmem:[#allocation2 + $0x40] sm:$0xff]  ;;  %s1405_s28 = scalar_lea.vmem %s1142_s2, 4096  ;;  %p1410_p2 = scmp.lt.s32.totalorder %s1142_s2, %s1142_s2 }
  0x29   :  { %1257 = vmatpush3.msra.mxu0 %v72_v1  ;;  %v65_v11 = vld [vmem:[#allocation2 + $0x48] sm:$0xff]  ;;  %v66_v12 = vld [vmem:[#allocation2 + $0x50] sm:$0xff]  ;;  %v67_v13 = vld [vmem:[#allocation2 + $0x58] sm:$0xff]  ;;  %p1406_p1 = scmp.ne.s32.totalorder %s1142_s2, %s1405_s28  ;;  %p1411_p3 = scmp.lt.s32.totalorder %s1405_s28, %s1405_s28 }
  0x2a   :  { %1259 = vmatmul.mubr.msk.f32.vlgmr.msra.gmra.mxu0 %vm74_vm0, %v57_v3  ;;  %v68_v14 = vld [vmem:[#allocation2 + $0x60] sm:$0xff]  ;;  %v69_v15 = vld [vmem:[#allocation2 + $0x68] sm:$0xff]  ;;  %v70_v16 = vld [vmem:[#allocation2 + $0x70] sm:$0xff] }
  0x2b   :  { %1261 = vmatprep.mubr.msk.f32.mxu0 %vm74_vm0, %v58_v4  ;;  %v71_v17 = vld [vmem:[#allocation2 + $0x78] sm:$0xff]  ;;  %v524_v24 = vld [vmem:[#allocation7] sm:$0xff]  ;;  %p1412_p4 = por %p1411_p3, %p1410_p2 }
  0x2c   :  { %v525_v22 = vld [vmem:[#allocation7 + $0x8] sm:$0xff] }
  0x2d   :  { %1334 = vmatprep.subr.mxu1 %v525_v22  ;;  %1282 = vmatprep.subr.mxu0 %v525_v22  ;;  %p1413_p5 = pnand %p1412_p4, %p1406_p1 }
  0x2e   :  { %1262 = vmatmul.mubr.msk.f32.gmra.mxu0 %vm74_vm0, %v59_v5  ;;  %1336 = vmatpush3.msra.mxu1 %v525_v22 }
  0x2f   :  { %1264 = vmatprep.mubr.msk.f32.mxu0 %vm74_vm0, %v60_v6  ;;  %1283 = vmatpush3.msra.mxu0 %v525_v22 }
  0x30   :  { %1335 = vmatprep.subr.mxu1 %v524_v24  ;;  %1284 = vmatprep.subr.mxu0 %v524_v24 }
  0x31   :  { %1337 = vmatpush3.msra.mxu1 %v524_v24  ;;  %1285 = vmatpush3.msra.mxu0 %v524_v24 }
  0x32   :  { %1265 = vmatmul.mubr.msk.f32.gmra.mxu0 %vm74_vm0, %v61_v7 }
  0x33   :  { %1267 = vmatprep.mubr.msk.f32.mxu0 %vm74_vm0, %v62_v8 }
  0x36   :  { %1268 = vmatmul.mubr.msk.f32.gmra.mxu0 %vm74_vm0, %v63_v9 }
  0x37   :  { %1270 = vmatprep.mubr.msk.f32.mxu0 %vm74_vm0, %v64_v10 }
  0x3a   :  { %1271 = vmatmul.mubr.msk.f32.gmra.mxu0 %vm74_vm0, %v65_v11 }
  0x3b   :  { %1273 = vmatprep.mubr.msk.f32.mxu0 %vm74_vm0, %v66_v12 }
  0x3e   :  { %1274 = vmatmul.mubr.msk.f32.gmra.mxu0 %vm74_vm0, %v67_v13 }
  0x3f   :  { %1276 = vmatprep.mubr.msk.f32.mxu0 %vm74_vm0, %v68_v14 }
  0x42   :  { %1277 = vmatmul.mubr.msk.f32.gmra.mxu0 %vm74_vm0, %v69_v15 }
  0x43   :  { %1279 = vmatprep.mubr.msk.f32.mxu0 %vm74_vm0, %v70_v16 }
  0x46   :  { %1280 = vmatmul.mubr.msk.f32.gmra.mxu0 %vm74_vm0, %v71_v17 }
  0xea   :  { %v1260_v18 = vpop.f32.mrf.mxu0 }
  0xec   :  { %v189_v19 = vpop.f32.mrf.mxu0 }
  0xee   :  { %v1263_v20 = vpop.f32.mrf.mxu0 }
  0xf0   :  { %v199_v21 = vpop.f32.mrf.mxu0 }
  0xf2   :  { %v1266_v23 = vpop.f32.mrf.mxu0 }
  0xf4   :  { %v209_v25 = vpop.f32.mrf.mxu0 }
  0xf5   :  { %332 = vxpose.xlu0.b32.start [1/2] (short) (narrow) %v209_v25, 32 }
  0xf6   :  { %v1269_v26 = vpop.f32.mrf.mxu0 }
  0xf8   :  { %v219_v27 = vpop.f32.mrf.mxu0 }
  0xf9   :  { %333 = vxpose.xlu0.b32.end [2/2] (short) (narrow) %v1266_v23, 32  ;;  %364 = vxpose.xlu1.b32.start [1/2] (short) (narrow) %v219_v27, 32 }
  0xfa   :  { %v1272_v28 = vpop.f32.mrf.mxu0 }
  0xfc   :  { %v229_v29 = vpop.f32.mrf.mxu0 }
  0xfd   :  { %365 = vxpose.xlu1.b32.end [2/2] (short) (narrow) %v1269_v26, 32 }
  0xfe   :  { %v1275_v30 = vpop.f32.mrf.mxu0 }
 0x100   :  { %v239_v31 = vpop.f32.mrf.mxu0 }
 0x102   :  { %396 = vxpose.xlu0.b32.start [1/2] (short) (narrow) %v229_v29, 32  ;;  %v1278_v32 = vpop.f32.mrf.mxu0 }
 0x104   :  { %v249_v33 = vpop.f32.mrf.mxu0 }
 0x106   :  { %397 = vxpose.xlu0.b32.end [2/2] (short) (narrow) %v1272_v28, 32  ;;  %428 = vxpose.xlu1.b32.start [1/2] (short) (narrow) %v239_v31, 32  ;;  %v1281_v34 = vpop.f32.mrf.mxu0 }
 0x108   :  { %v259_v35 = vpop.f32.mrf.mxu0 }
 0x10a   :  { %429 = vxpose.xlu1.b32.end [2/2] (short) (narrow) %v1275_v30, 32 }
 0x10f   :  { %268 = vxpose.xlu0.b32.start [1/2] (short) (narrow) %v189_v19, 32 }
 0x113   :  { %269 = vxpose.xlu0.b32.end [2/2] (short) (narrow) %v1260_v18, 32  ;;  %460 = vxpose.xlu1.b32.start [1/2] (short) (narrow) %v249_v33, 32 }
 0x117   :  { %461 = vxpose.xlu1.b32.end [2/2] (short) (narrow) %v1278_v32, 32 }
 0x11c   :  { %300 = vxpose.xlu0.b32.start [1/2] (short) (narrow) %v199_v21, 32 }
 0x120   :  { %301 = vxpose.xlu0.b32.end [2/2] (short) (narrow) %v1263_v20, 32  ;;  %492 = vxpose.xlu1.b32.start [1/2] (short) (narrow) %v259_v35, 32 }
 0x124   :  { %493 = vxpose.xlu1.b32.end [2/2] (short) (narrow) %v1281_v34, 32 }
 0x171   :  { %v348_v36 = vpop.trf.xlu0 }
 0x172   :  { %1298 = vmatprep.mubr.msk.f32.mxu1 %vm74_vm0, %v348_v36 }
 0x175   :  { %v349_v37 = vpop.trf.xlu0  ;;  %v380_v38 = vpop.trf.xlu1 }
 0x176   :  { %1299 = vmatmul.mubr.msk.f32.vlgmr.msra.gmra.mxu1 %vm74_vm0, %v349_v37 }
 0x179   :  { %v350_v39 = vpop.trf.xlu0  ;;  %v381_v40 = vpop.trf.xlu1 }
 0x17a   :  { %1301 = vmatprep.mubr.msk.f32.mxu1 %vm74_vm0, %v350_v39 }
 0x17d   :  { %v351_v41 = vpop.trf.xlu0  ;;  %v382_v42 = vpop.trf.xlu1 }
 0x17e   :  { %1302 = vmatmul.mubr.msk.f32.gmra.mxu1 %vm74_vm0, %v351_v41 }
 0x17f   :  { %1304 = vmatprep.mubr.msk.f32.mxu1 %vm74_vm0, %v380_v38 }
 0x181   :  { %v412_v43 = vpop.trf.xlu0  ;;  %v383_v44 = vpop.trf.xlu1 }
 0x182   :  { %1305 = vmatmul.mubr.msk.f32.gmra.mxu1 %vm74_vm0, %v381_v40 }
 0x183   :  { %1307 = vmatprep.mubr.msk.f32.mxu1 %vm74_vm0, %v382_v42 }
 0x185   :  { %v413_v45 = vpop.trf.xlu0  ;;  %v444_v46 = vpop.trf.xlu1 }
 0x186   :  { %1308 = vmatmul.mubr.msk.f32.gmra.mxu1 %vm74_vm0, %v383_v44 }
 0x187   :  { %1310 = vmatprep.mubr.msk.f32.mxu1 %vm74_vm0, %v412_v43 }
 0x189   :  { %v414_v47 = vpop.trf.xlu0  ;;  %v445_v48 = vpop.trf.xlu1 }
 0x18a   :  { %1311 = vmatmul.mubr.msk.f32.gmra.mxu1 %vm74_vm0, %v413_v45 }
 0x18b   :  { %1313 = vmatprep.mubr.msk.f32.mxu1 %vm74_vm0, %v414_v47 }
 0x18d   :  { %v415_v49 = vpop.trf.xlu0  ;;  %v446_v50 = vpop.trf.xlu1 }
 0x18e   :  { %1314 = vmatmul.mubr.msk.f32.gmra.mxu1 %vm74_vm0, %v415_v49 }
 0x18f   :  { %1316 = vmatprep.mubr.msk.f32.mxu1 %vm74_vm0, %v444_v46 }
 0x191   :  { %v284_v51 = vpop.trf.xlu0  ;;  %v447_v52 = vpop.trf.xlu1 }
 0x192   :  { %1286 = vmatprep.mubr.msk.f32.mxu0 %vm74_vm0, %v284_v51  ;;  %1317 = vmatmul.mubr.msk.f32.gmra.mxu1 %vm74_vm0, %v445_v48 }
 0x193   :  { %1319 = vmatprep.mubr.msk.f32.mxu1 %vm74_vm0, %v446_v50 }
 0x195   :  { %v285_v53 = vpop.trf.xlu0  ;;  %v476_v54 = vpop.trf.xlu1 }
 0x196   :  { %1287 = vmatmul.mubr.msk.f32.vlgmr.msra.gmra.mxu0 %vm74_vm0, %v285_v53  ;;  %1320 = vmatmul.mubr.msk.f32.gmra.mxu1 %vm74_vm0, %v447_v52 }
 0x197   :  { %1322 = vmatprep.mubr.msk.f32.mxu1 %vm74_vm0, %v476_v54 }
 0x199   :  { %v286_v55 = vpop.trf.xlu0  ;;  %v477_v56 = vpop.trf.xlu1 }
 0x19a   :  { %1289 = vmatprep.mubr.msk.f32.mxu0 %vm74_vm0, %v286_v55  ;;  %1323 = vmatmul.mubr.msk.f32.gmra.mxu1 %vm74_vm0, %v477_v56 }
 0x19d   :  { %v287_v57 = vpop.trf.xlu0  ;;  %v478_v58 = vpop.trf.xlu1 }
 0x19e   :  { %1290 = vmatmul.mubr.msk.f32.gmra.mxu0 %vm74_vm0, %v287_v57  ;;  %1325 = vmatprep.mubr.msk.f32.mxu1 %vm74_vm0, %v478_v58 }
 0x1a1   :  { %v316_v59 = vpop.trf.xlu0  ;;  %v479_v60 = vpop.trf.xlu1 }
 0x1a2   :  { %1292 = vmatprep.mubr.msk.f32.mxu0 %vm74_vm0, %v316_v59  ;;  %1326 = vmatmul.mubr.msk.f32.gmra.mxu1 %vm74_vm0, %v479_v60 }
 0x1a5   :  { %v317_v61 = vpop.trf.xlu0  ;;  %v508_v62 = vpop.trf.xlu1 }
 0x1a6   :  { %1293 = vmatmul.mubr.msk.f32.gmra.mxu0 %vm74_vm0, %v317_v61  ;;  %1328 = vmatprep.mubr.msk.f32.mxu1 %vm74_vm0, %v508_v62 }
 0x1a9   :  { %v318_v63 = vpop.trf.xlu0  ;;  %v509_v0 = vpop.trf.xlu1 }
 0x1aa   :  { %1295 = vmatprep.mubr.msk.f32.mxu0 %vm74_vm0, %v318_v63  ;;  %1329 = vmatmul.mubr.msk.f32.gmra.mxu1 %vm74_vm0, %v509_v0 }
 0x1ad   :  { %v319_v1 = vpop.trf.xlu0  ;;  %v510_v2 = vpop.trf.xlu1 }
 0x1ae   :  { %1296 = vmatmul.mubr.msk.f32.gmra.mxu0 %vm74_vm0, %v319_v1  ;;  %1331 = vmatprep.mubr.msk.f32.mxu1 %vm74_vm0, %v510_v2 }
 0x1b1   :  { %v511_v3 = vpop.trf.xlu1 }
 0x1b2   :  { %1332 = vmatmul.mubr.msk.f32.gmra.mxu1 %vm74_vm0, %v511_v3 }
 0x236   :  { %v1300_v4 = vpop.f32.mrf.mxu1 }
 0x238   :  { %v728_v5 = vpop.f32.mrf.mxu1 }
 0x23e   :  { %v1303_v6 = vpop.f32.mrf.mxu1 }
 0x240   :  { %v738_v7 = vpop.f32.mrf.mxu1 }
 0x242   :  { %v1306_v10 = vpop.f32.mrf.mxu1 }
 0x244   :  { %v748_v11 = vpop.f32.mrf.mxu1 }
 0x246   :  { %v1309_v14 = vpop.f32.mrf.mxu1 }
 0x248   :  { %v758_v15 = vpop.f32.mrf.mxu1 }
 0x24a   :  { %v1312_v18 = vpop.f32.mrf.mxu1 }
 0x24c   :  { %v768_v19 = vpop.f32.mrf.mxu1 }
 0x24e   :  { %v1315_v22 = vpop.f32.mrf.mxu1 }
 0x250   :  { %v778_v23 = vpop.f32.mrf.mxu1 }
 0x252   :  { %v1318_v24 = vpop.f32.mrf.mxu1 }
 0x254   :  { %v788_v25 = vpop.f32.mrf.mxu1 }
 0x256   :  { %v1288_v8 = vpop.f32.mrf.mxu0  ;;  %v1321_v26 = vpop.f32.mrf.mxu1 }
 0x258   :  { %v688_v9 = vpop.f32.mrf.mxu0  ;;  %v798_v27 = vpop.f32.mrf.mxu1 }
 0x259   :  { %847 = vxpose.xlu0.b32.start [1/4] (short) (narrow) %v688_v9, 32 }
 0x25a   :  { %v1324_v28 = vpop.f32.mrf.mxu1 }
 0x25c   :  { %v808_v29 = vpop.f32.mrf.mxu1 }
 0x25d   :  { %848 = vxpose.xlu0.b32.cont [2/4] (short) (narrow) %v1288_v8, 32 }
 0x25e   :  { %v1291_v12 = vpop.f32.mrf.mxu0 }
 0x260   :  { %v698_v13 = vpop.f32.mrf.mxu0 }
 0x261   :  { %849 = vxpose.xlu0.b32.cont [3/4] (short) (narrow) %v698_v13, 32 }
 0x262   :  { %v1327_v30 = vpop.f32.mrf.mxu1 }
 0x264   :  { %v818_v31 = vpop.f32.mrf.mxu1 }
 0x265   :  { %850 = vxpose.xlu0.b32.end [4/4] (short) (narrow) %v1291_v12, 32 }
 0x266   :  { %v1294_v16 = vpop.f32.mrf.mxu0 }
 0x268   :  { %v708_v17 = vpop.f32.mrf.mxu0 }
 0x269   :  { %911 = vxpose.xlu0.b32.start [1/4] (short) (narrow) %v728_v5, 32  ;;  %879 = vxpose.xlu1.b32.start [1/4] (short) (narrow) %v708_v17, 32 }
 0x26a   :  { %v1330_v32 = vpop.f32.mrf.mxu1 }
 0x26c   :  { %v828_v33 = vpop.f32.mrf.mxu1 }
 0x26d   :  { %912 = vxpose.xlu0.b32.cont [2/4] (short) (narrow) %v1300_v4, 32  ;;  %880 = vxpose.xlu1.b32.cont [2/4] (short) (narrow) %v1294_v16, 32 }
 0x26e   :  { %v1297_v20 = vpop.f32.mrf.mxu0 }
 0x270   :  { %v718_v21 = vpop.f32.mrf.mxu0 }
 0x271   :  { %913 = vxpose.xlu0.b32.cont [3/4] (short) (narrow) %v738_v7, 32  ;;  %881 = vxpose.xlu1.b32.cont [3/4] (short) (narrow) %v718_v21, 32 }
 0x272   :  { %v1333_v34 = vpop.f32.mrf.mxu1 }
 0x274   :  { %v838_v35 = vpop.f32.mrf.mxu1 }
 0x275   :  { %914 = vxpose.xlu0.b32.end [4/4] (short) (narrow) %v1303_v6, 32  ;;  %882 = vxpose.xlu1.b32.end [4/4] (short) (narrow) %v1297_v20, 32 }
 0x279   :  { %975 = vxpose.xlu0.b32.start [1/4] (short) (narrow) %v768_v19, 32  ;;  %943 = vxpose.xlu1.b32.start [1/4] (short) (narrow) %v748_v11, 32 }
 0x27d   :  { %976 = vxpose.xlu0.b32.cont [2/4] (short) (narrow) %v1312_v18, 32  ;;  %944 = vxpose.xlu1.b32.cont [2/4] (short) (narrow) %v1306_v10, 32 }
 0x281   :  { %977 = vxpose.xlu0.b32.cont [3/4] (short) (narrow) %v778_v23, 32  ;;  %945 = vxpose.xlu1.b32.cont [3/4] (short) (narrow) %v758_v15, 32 }
 0x285   :  { %978 = vxpose.xlu0.b32.end [4/4] (short) (narrow) %v1315_v22, 32  ;;  %946 = vxpose.xlu1.b32.end [4/4] (short) (narrow) %v1309_v14, 32 }
 0x289   :  { %1039 = vxpose.xlu0.b32.start [1/4] (short) (narrow) %v808_v29, 32  ;;  %1007 = vxpose.xlu1.b32.start [1/4] (short) (narrow) %v788_v25, 32 }
 0x28d   :  { %1040 = vxpose.xlu0.b32.cont [2/4] (short) (narrow) %v1324_v28, 32  ;;  %1008 = vxpose.xlu1.b32.cont [2/4] (short) (narrow) %v1318_v24, 32 }
 0x291   :  { %1041 = vxpose.xlu0.b32.cont [3/4] (short) (narrow) %v818_v31, 32  ;;  %1009 = vxpose.xlu1.b32.cont [3/4] (short) (narrow) %v798_v27, 32 }
 0x295   :  { %1042 = vxpose.xlu0.b32.end [4/4] (short) (narrow) %v1327_v30, 32  ;;  %1010 = vxpose.xlu1.b32.end [4/4] (short) (narrow) %v1321_v26, 32 }
 0x299   :  { %1071 = vxpose.xlu1.b32.start [1/4] (short) (narrow) %v828_v33, 32 }
 0x29d   :  { %1072 = vxpose.xlu1.b32.cont [2/4] (short) (narrow) %v1330_v32, 32 }
 0x2a1   :  { %1073 = vxpose.xlu1.b32.cont [3/4] (short) (narrow) %v838_v35, 32 }
 0x2a5   :  { %1074 = vxpose.xlu1.b32.end [4/4] (short) (narrow) %v1333_v34, 32 }
 0x2d5   :  { %v863_v36 = vpop.trf.xlu0 }
 0x2d6   :  { %1104 = vst.msk [vmem:[#allocation8] sm:$0xff] %vm1103_vm1, %v863_v36 }
 0x2d9   :  { %v864_v37 = vpop.trf.xlu0 }
 0x2da   :  { %1105 = vst.msk [vmem:[#allocation8 + $0x8] sm:$0xff] %vm1103_vm1, %v864_v37 }
 0x2dd   :  { %v865_v38 = vpop.trf.xlu0 }
 0x2de   :  { %1106 = vst.msk [vmem:[#allocation8 + $0x10] sm:$0xff] %vm1103_vm1, %v865_v38 }
 0x2e1   :  { %v866_v39 = vpop.trf.xlu0 }
 0x2e2   :  { %1107 = vst.msk [vmem:[#allocation8 + $0x18] sm:$0xff] %vm1103_vm1, %v866_v39 }
 0x2e5   :  { %v895_v40 = vpop.trf.xlu1  ;;  %v927_v41 = vpop.trf.xlu0 }
 0x2e6   :  { %1108 = vst.msk [vmem:[#allocation8 + $0x20] sm:$0xff] %vm1103_vm1, %v895_v40  ;;  %1112 = vst.msk [vmem:[#allocation8 + $0x40] sm:$0xff] %vm1103_vm1, %v927_v41 }
 0x2e9   :  { %v896_v42 = vpop.trf.xlu1  ;;  %v928_v43 = vpop.trf.xlu0 }
 0x2ea   :  { %1109 = vst.msk [vmem:[#allocation8 + $0x28] sm:$0xff] %vm1103_vm1, %v896_v42  ;;  %1113 = vst.msk [vmem:[#allocation8 + $0x48] sm:$0xff] %vm1103_vm1, %v928_v43 }
 0x2ed   :  { %v897_v44 = vpop.trf.xlu1  ;;  %v929_v45 = vpop.trf.xlu0 }
 0x2ee   :  { %1110 = vst.msk [vmem:[#allocation8 + $0x30] sm:$0xff] %vm1103_vm1, %v897_v44  ;;  %1114 = vst.msk [vmem:[#allocation8 + $0x50] sm:$0xff] %vm1103_vm1, %v929_v45 }
 0x2f1   :  { %v898_v46 = vpop.trf.xlu1  ;;  %v930_v47 = vpop.trf.xlu0 }
 0x2f2   :  { %1111 = vst.msk [vmem:[#allocation8 + $0x38] sm:$0xff] %vm1103_vm1, %v898_v46  ;;  %1115 = vst.msk [vmem:[#allocation8 + $0x58] sm:$0xff] %vm1103_vm1, %v930_v47 }
 0x2f5   :  { %v959_v48 = vpop.trf.xlu1  ;;  %v991_v49 = vpop.trf.xlu0 }
 0x2f6   :  { %1116 = vst.msk [vmem:[#allocation8 + $0x60] sm:$0xff] %vm1103_vm1, %v959_v48  ;;  %1120 = vst.msk [vmem:[#allocation8 + $0x80] sm:$0xff] %vm1103_vm1, %v991_v49 }
 0x2f9   :  { %v960_v50 = vpop.trf.xlu1  ;;  %v992_v51 = vpop.trf.xlu0 }
 0x2fa   :  { %1117 = vst.msk [vmem:[#allocation8 + $0x68] sm:$0xff] %vm1103_vm1, %v960_v50  ;;  %1121 = vst.msk [vmem:[#allocation8 + $0x88] sm:$0xff] %vm1103_vm1, %v992_v51 }
 0x2fd   :  { %v961_v52 = vpop.trf.xlu1  ;;  %v993_v53 = vpop.trf.xlu0 }
 0x2fe   :  { %1118 = vst.msk [vmem:[#allocation8 + $0x70] sm:$0xff] %vm1103_vm1, %v961_v52  ;;  %1122 = vst.msk [vmem:[#allocation8 + $0x90] sm:$0xff] %vm1103_vm1, %v993_v53 }
 0x301   :  { %v962_v54 = vpop.trf.xlu1  ;;  %v994_v55 = vpop.trf.xlu0 }
 0x302   :  { %1119 = vst.msk [vmem:[#allocation8 + $0x78] sm:$0xff] %vm1103_vm1, %v962_v54  ;;  %1123 = vst.msk [vmem:[#allocation8 + $0x98] sm:$0xff] %vm1103_vm1, %v994_v55 }
 0x305   :  { %v1023_v56 = vpop.trf.xlu1  ;;  %v1055_v57 = vpop.trf.xlu0 }
 0x306   :  { %1124 = vst.msk [vmem:[#allocation8 + $0xa0] sm:$0xff] %vm1103_vm1, %v1023_v56  ;;  %1128 = vst.msk [vmem:[#allocation8 + $0xc0] sm:$0xff] %vm1103_vm1, %v1055_v57 }
 0x309   :  { %v1024_v58 = vpop.trf.xlu1  ;;  %v1056_v59 = vpop.trf.xlu0 }
 0x30a   :  { %1125 = vst.msk [vmem:[#allocation8 + $0xa8] sm:$0xff] %vm1103_vm1, %v1024_v58  ;;  %1129 = vst.msk [vmem:[#allocation8 + $0xc8] sm:$0xff] %vm1103_vm1, %v1056_v59 }
 0x30d   :  { %v1025_v60 = vpop.trf.xlu1  ;;  %v1057_v61 = vpop.trf.xlu0 }
 0x30e   :  { %1126 = vst.msk [vmem:[#allocation8 + $0xb0] sm:$0xff] %vm1103_vm1, %v1025_v60  ;;  %1130 = vst.msk [vmem:[#allocation8 + $0xd0] sm:$0xff] %vm1103_vm1, %v1057_v61 }
 0x311   :  { %v1026_v62 = vpop.trf.xlu1  ;;  %v1058_v63 = vpop.trf.xlu0 }
 0x312   :  { %1127 = vst.msk [vmem:[#allocation8 + $0xb8] sm:$0xff] %vm1103_vm1, %v1026_v62  ;;  %1131 = vst.msk [vmem:[#allocation8 + $0xd8] sm:$0xff] %vm1103_vm1, %v1058_v63 }
 0x315   :  { %v1087_v0 = vpop.trf.xlu1 }
 0x316   :  { %1132 = vst.msk [vmem:[#allocation8 + $0xe0] sm:$0xff] %vm1103_vm1, %v1087_v0 }
 0x319   :  { %v1088_v1 = vpop.trf.xlu1 }
 0x31a   :  { %1133 = vst.msk [vmem:[#allocation8 + $0xe8] sm:$0xff] %vm1103_vm1, %v1088_v1 }
 0x31d   :  { %v1089_v2 = vpop.trf.xlu1 }
 0x31e   :  { %1134 = vst.msk [vmem:[#allocation8 + $0xf0] sm:$0xff] %vm1103_vm1, %v1089_v2 }
 0x321   :  { %v1090_v3 = vpop.trf.xlu1 }
 0x322   :  { %1135 = vst.msk [vmem:[#allocation8 + $0xf8] sm:$0xff] %vm1103_vm1, %v1090_v3 }
 0x323   :  { %1416 = shalt.err (!%p1413_p5)
}
 0x324   :  { %1147 = dma.vmem_to_hbm [thread:$0]  %s1142_s2, 4096, %s1564_s3, [#allocation4], %s1433_s17, %s1433_s17, %s1434_s18  }
 0x325   :  { %1429 = dma.done.wait [#allocation4], 4096  }
 0x326   :  { %1430 = vsyncadd [#allocation4], 4294963200 }
 0x327   :  { %1151 = vsyncpa [#allocation3], 1 }
 0x328   :  { %1152 = vsyncpa [#allocation6], 1 }
 0x329   :  { %1153 = vsyncpa [#allocation4], 1 }

</bundles_post_ra>
